<compile_context>
chip_gen: v7x
topology: tpu7x:2x2x1
jax: 0.10.0
libtpu: 0.0.40
codegen_flags: <defaults>
</compile_context>

<pallas_src>
import functools

import numpy as np
import jax
import jax.numpy as jnp
from jax.experimental import pallas as pl
from jax.experimental.pallas import tpu as pltpu


def _round_up(x, mult):
    return -(-x // mult) * mult


def _pairwise_loss_kernel(w_ref, packed_ref, out_ref, *, true_b):
    # w_ref      : (1, K_pad)  f32  flattened mu.weight (flat = row*n + col), lane-dense,
    #                               block-invariant (VMEM-resident across the grid)
    # packed_ref : (8, B_tile) i32  row 0 = fi, row 1 = fj, row 2 = bitcast(y_diff), rest pad
    # out_ref    : (1, B_tile) f32  per-pair loss terms (padded pairs -> exactly 0)
    pid = pl.program_id(0)
    k_pad = w_ref.shape[1]
    b_tile = out_ref.shape[1]

    fi = packed_ref[0:1, :]                                    # (1, B_tile) i32
    fj = packed_ref[1:2, :]                                    # (1, B_tile) i32
    yd = pltpu.bitcast(packed_ref[2:3, :], jnp.float32)        # (1, B_tile) f32

    # Signed one-hot over the flat-weight (sublane) axis; multiply-reduce on the MXU.
    k_iota = jax.lax.broadcasted_iota(jnp.int32, (k_pad, b_tile), 0)
    delta = (jnp.where(k_iota == fi, 1.0, 0.0)
             - jnp.where(k_iota == fj, 1.0, 0.0))              # (K_pad, B_tile) f32
    mu_diff = jnp.dot(w_ref[...], delta,
                      preferred_element_type=jnp.float32)      # (1, B_tile) lane-dense

    # Numerically stable softplus(z) = max(z, 0) + log(1 + exp(-|z|)).
    z = -yd * mu_diff
    loss = jnp.maximum(z, 0.0) + jnp.log(1.0 + jnp.exp(-jnp.abs(z)))

    # Mask padded pairs (global pair index >= true B) so they contribute 0 to the sum.
    lane = jax.lax.broadcasted_iota(jnp.int32, (1, b_tile), 1)
    valid = (pid * b_tile + lane) < true_b
    out_ref[...] = jnp.where(valid, loss, 0.0)


def pairwise_loss(weight, idx_i, idx_j, y_diff, *, b_tile=None,
                  temp_vmem_budget_bytes=16 << 20):
    """weight: (m, n) f32; idx_i, idx_j: (B, 2) int; y_diff: (B,) f32 -> scalar f32."""
    m, n = weight.shape
    B = int(idx_i.shape[0])
    K = m * n
    assert K < 2**31, "flat index row*n + col would overflow int32"
    K_pad = _round_up(K, 128)          # lane alignment for the (1, K_pad) weight row

    if b_tile is None:
        # ~4 live (K_pad, b_tile) f32 temporaries per pair column in the one-hot block;
        # keep them inside a conservative budget (safe under v7x's 32 MiB scoped VMEM,
        # plenty of headroom on v5e/v6e's 128 MiB).
        per_pair_bytes = 16 * K_pad
        cap = max(128, (temp_vmem_budget_bytes // per_pair_bytes) // 128 * 128)
        b_tile = int(min(2048, cap, max(128, _round_up(B, 128))))
    b_tile = max(128, (int(b_tile) // 128) * 128)

    B_pad = _round_up(max(B, 1), b_tile)
    grid = (B_pad // b_tile,)

    # --- host-side layout glue ------------------------------------------------
    w_row = jnp.pad(jnp.asarray(weight, jnp.float32).reshape(K),
                    (0, K_pad - K)).reshape(1, K_pad)          # lane-dense flat weight

    fi = idx_i[:, 0].astype(jnp.int32) * n + idx_i[:, 1].astype(jnp.int32)
    fj = idx_j[:, 0].astype(jnp.int32) * n + idx_j[:, 1].astype(jnp.int32)
    yd_bits = jax.lax.bitcast_convert_type(jnp.asarray(y_diff, jnp.float32), jnp.int32)

    # Pack fi / fj / yd into one sublane-dense (8, B_pad) i32 array (single DMA / step).
    packed = jnp.zeros((8, B_pad), jnp.int32)
    packed = packed.at[0, :B].set(fi).at[1, :B].set(fj).at[2, :B].set(yd_bits)

    kernel = functools.partial(_pairwise_loss_kernel, true_b=B)

    per_pair = pl.pallas_call(
        kernel,
        out_shape=jax.ShapeDtypeStruct((1, B_pad), jnp.float32),
        grid_spec=pltpu.PrefetchScalarGridSpec(
            num_scalar_prefetch=0,
            grid=grid,
            in_specs=[
                pl.BlockSpec((1, K_pad), lambda b: (0, 0)),    # weight: VMEM-resident
                pl.BlockSpec((8, b_tile), lambda b: (0, b)),   # packed fi/fj/yd
            ],
            out_specs=pl.BlockSpec((1, b_tile), lambda b: (0, b)),
        ),
        compiler_params=pltpu.CompilerParams(
            dimension_semantics=("parallel",),   # no carried state -> cores may split B
            vmem_limit_bytes=32 * 1024 * 1024,
        ),
    )(w_row, packed)

    # Final mean: one XLA reduce; padded lanes are exactly 0.
    return jnp.sum(per_pair) / jnp.float32(B)


def _reference_loss(weight, idx_i, idx_j, y_diff):
    mu_i = weight[idx_i[:, 0], idx_i[:, 1]]
    mu_j = weight[idx_j[:, 0], idx_j[:, 1]]
    z = -y_diff * (mu_i - mu_j)
    # stable softplus (same math as the kernel)
    return jnp.mean(jnp.maximum(z, 0.0) + jnp.log(1.0 + jnp.exp(-jnp.abs(z))))


def _make_inputs(key, m, n, B):
    k_w, k_i0, k_i1, k_j0, k_j1, k_y = jax.random.split(key, 6)
    bound = 1.0 / np.sqrt(n)   # PyTorch Linear default init range
    weight = jax.random.uniform(k_w, (m, n), jnp.float32, minval=-bound, maxval=bound)
    idx_i = jnp.stack(
        [jax.random.randint(k_i0, (B,), 0, m), jax.random.randint(k_i1, (B,), 0, n)],
        axis=1,
    )
    idx_j = jnp.stack(
        [jax.random.randint(k_j0, (B,), 0, m), jax.random.randint(k_j1, (B,), 0, n)],
        axis=1,
    )
    y_diff = jnp.where(jax.random.bernoulli(k_y, 0.5, (B,)), 1.0, -1.0).astype(jnp.float32)
    return weight, idx_i, idx_j, y_diff


if __name__ == "__main__":
    key = jax.random.PRNGKey(0)
    k1, k2 = jax.random.split(key, 2)

    # Case 1: shapes matching the toy module (Y_obs of shape (4, 16), 8 pairs).
    weight, idx_i, idx_j, y_diff = _make_inputs(k1, m=4, n=16, B=8)
    loss = pairwise_loss(weight, idx_i, idx_j, y_diff)
    jax.block_until_ready(loss)
    ref = _reference_loss(weight, idx_i, idx_j, y_diff)
    np.testing.assert_allclose(np.asarray(loss), np.asarray(ref), rtol=1e-5, atol=1e-6)

    # Case 2: exercise the multi-tile parallel grid path + padded-tail masking.
    weight2, idx_i2, idx_j2, y_diff2 = _make_inputs(k2, m=6, n=20, B=200)
    loss2 = pairwise_loss(weight2, idx_i2, idx_j2, y_diff2, b_tile=128)  # grid = (2,)
    jax.block_until_ready(loss2)
    ref2 = _reference_loss(weight2, idx_i2, idx_j2, y_diff2)
    np.testing.assert_allclose(np.asarray(loss2), np.asarray(ref2), rtol=1e-5, atol=1e-6)

    print("KERNEL_OK")
</pallas_src>

<mosaic_0001>
module attributes {stable_mosaic.version = 11 : i64} {
  func.func @_pairwise_loss_kernel(%arg0: i32, %arg1: memref<1x128xf32, #tpu.memory_space<vmem>>, %arg2: memref<8x128xi32, #tpu.memory_space<vmem>>, %arg3: memref<1x128xf32, #tpu.memory_space<vmem>>) attributes {dimension_semantics = [#tpu.dimension_semantics<parallel>], iteration_bounds = array<i64: 1>, scalar_prefetch = 0 : i64, scratch_operands = 0 : i64, tpu.core_type = #tpu.core_type<tc>, window_params = [{pipeline_mode = #tpu.pipeline_mode<synchronous>, transform_indices = @transform_0, window_bounds = array<i64: 1, 128>}, {transform_indices = @transform_1, window_bounds = array<i64: 8, 128>}, {transform_indices = @transform_2, window_bounds = array<i64: 1, 128>}]} {
    %c0 = arith.constant 0 : index
    %c0_0 = arith.constant 0 : index
    %0 = vector.load %arg2[%c0, %c0_0] : memref<8x128xi32, #tpu.memory_space<vmem>>, vector<1x128xi32>
    %c1 = arith.constant 1 : index
    %c0_1 = arith.constant 0 : index
    %1 = vector.load %arg2[%c1, %c0_1] : memref<8x128xi32, #tpu.memory_space<vmem>>, vector<1x128xi32>
    %c2 = arith.constant 2 : index
    %c0_2 = arith.constant 0 : index
    %2 = vector.load %arg2[%c2, %c0_2] : memref<8x128xi32, #tpu.memory_space<vmem>>, vector<1x128xi32>
    %3 = tpu.bitcast %2 : vector<1x128xi32> -> vector<1x128xf32>
    %4 = tpu.iota {dimensions = array<i32: 0>} : vector<128x128xi32>
    %5 = vector.broadcast %0 : vector<1x128xi32> to vector<128x128xi32>
    %6 = arith.cmpi eq, %4, %5 : vector<128x128xi32>
    %cst = arith.constant 1.000000e+00 : f32
    %cst_3 = arith.constant 0.000000e+00 : f32
    %7 = vector.broadcast %cst : f32 to vector<128x128xf32>
    %8 = vector.broadcast %cst_3 : f32 to vector<128x128xf32>
    %9 = arith.select %6, %7, %8 : vector<128x128xi1>, vector<128x128xf32>
    %10 = vector.broadcast %1 : vector<1x128xi32> to vector<128x128xi32>
    %11 = arith.cmpi eq, %4, %10 : vector<128x128xi32>
    %cst_4 = arith.constant 1.000000e+00 : f32
    %cst_5 = arith.constant 0.000000e+00 : f32
    %12 = vector.broadcast %cst_4 : f32 to vector<128x128xf32>
    %13 = vector.broadcast %cst_5 : f32 to vector<128x128xf32>
    %14 = arith.select %11, %12, %13 : vector<128x128xi1>, vector<128x128xf32>
    %15 = arith.subf %9, %14 : vector<128x128xf32>
    %c0_6 = arith.constant 0 : index
    %c0_7 = arith.constant 0 : index
    %16 = vector.load %arg1[%c0_6, %c0_7] : memref<1x128xf32, #tpu.memory_space<vmem>>, vector<1x128xf32>
    %cst_8 = arith.constant dense<0.000000e+00> : vector<1x128xf32>
    %17 = tpu.matmul %16, %15, %cst_8 {dimension_numbers = #tpu.dot_dimension_numbers<[1], [0], [0], [1], [0, 0, 1, 1], [], []>} : vector<1x128xf32>, vector<128x128xf32>, vector<1x128xf32> -> vector<1x128xf32>
    %cst_9 = arith.constant 0.000000e+00 : f32
    %18 = vector.broadcast %cst_9 : f32 to vector<1x128xf32>
    %19 = arith.subf %18, %3 : vector<1x128xf32>
    %20 = arith.mulf %19, %17 : vector<1x128xf32>
    %cst_10 = arith.constant 0.000000e+00 : f32
    %21 = vector.broadcast %cst_10 : f32 to vector<1x128xf32>
    %22 = arith.maximumf %20, %21 : vector<1x128xf32>
    %23 = math.absf %20 : vector<1x128xf32>
    %cst_11 = arith.constant 0.000000e+00 : f32
    %24 = vector.broadcast %cst_11 : f32 to vector<1x128xf32>
    %25 = arith.subf %24, %23 : vector<1x128xf32>
    %26 = math.exp %25 : vector<1x128xf32>
    %cst_12 = arith.constant 1.000000e+00 : f32
    %27 = vector.broadcast %cst_12 : f32 to vector<1x128xf32>
    %28 = arith.addf %27, %26 : vector<1x128xf32>
    %29 = math.log %28 : vector<1x128xf32>
    %30 = arith.addf %22, %29 : vector<1x128xf32>
    %31 = tpu.iota {dimensions = array<i32: 1>} : vector<1x128xi32>
    %c128_i32 = arith.constant 128 : i32
    %32 = arith.muli %arg0, %c128_i32 : i32
    %33 = vector.broadcast %32 : i32 to vector<1x128xi32>
    %34 = arith.addi %33, %31 : vector<1x128xi32>
    %c8_i32 = arith.constant 8 : i32
    %35 = vector.broadcast %c8_i32 : i32 to vector<1x128xi32>
    %36 = arith.cmpi slt, %34, %35 : vector<1x128xi32>
    %cst_13 = arith.constant 0.000000e+00 : f32
    %37 = vector.broadcast %cst_13 : f32 to vector<1x128xf32>
    %38 = arith.select %36, %30, %37 : vector<1x128xi1>, vector<1x128xf32>
    %c0_14 = arith.constant 0 : index
    %c0_15 = arith.constant 0 : index
    %39 = vector.load %arg3[%c0_14, %c0_15] : memref<1x128xf32, #tpu.memory_space<vmem>>, vector<1x128xf32>
    tpu.vector_store %arg3[%c0_14, %c0_15], %38 {strides = array<i32>} : memref<1x128xf32, #tpu.memory_space<vmem>>, vector<1x128xf32>,
    return
  }
  func.func @transform_0(%arg0: i32) -> (i32, i32) {
    %c0_i32 = arith.constant 0 : i32
    %c0_i32_0 = arith.constant 0 : i32
    %c0_i32_1 = arith.constant 0 : i32
    return %c0_i32, %c0_i32_0 : i32, i32
  }
  func.func @transform_1(%arg0: i32) -> (i32, i32) {
    %c0_i32 = arith.constant 0 : i32
    %c0_i32_0 = arith.constant 0 : i32
    return %c0_i32, %arg0 : i32, i32
  }
  func.func @transform_2(%arg0: i32) -> (i32, i32) {
    %c0_i32 = arith.constant 0 : i32
    %c0_i32_0 = arith.constant 0 : i32
    return %c0_i32, %arg0 : i32, i32
  }
}

</mosaic_0001>

<bundles_post_ra>
// kernel: tpu_custom_call.1
= control target key start
LH: loop header
LB: loop body
LE: loop exit
PB: predicated region body
PF: predicated region fallthrough
CT: control target
= control target key end

     0   :  { %7 = vsyncpa [#allocation3], 0  ;;  %s586_s0 = inlined_call_operand.hbm [shape: f32[1,128], index: 0, kind: input, shape index: {}]   ;;  %s587_s1 = inlined_call_operand.hbm [shape: s32[8,128], index: 1, kind: input, shape index: {}]   ;;  %s588_s2 = inlined_call_operand.hbm [shape: f32[1,128], index: 2, kind: output, shape index: {}]  }
   0x1   :  { %8 = vsyncpa [#allocation6], 0 }
   0x2   :  { %9 = vsyncpa [#allocation4], 0  ;;  %s411_s9 = smov [#allocation2]   ;;  %s412_s11 = smov [#allocation5]  }
   0x3   :  { %s16_s10 = sshll.u32 %s411_s9, 4  ;;  %s26_s12 = sshll.u32 %s412_s11, 4  ;;  %s17_s10 = int_to_ptr.vmem [resolvable:$true] %s16_s10  ;;  %s27_s12 = int_to_ptr.vmem [resolvable:$true] %s26_s12 }
   0x4   :  { %s339_s15 = scalar_lea.hbm %s586_s0, 16 }
   0x5   :  { %p340_p0 = scmp.ne.s32.totalorder %s586_s0, %s339_s15  ;;  %p343_p1 = scmp.lt.u32.totalorder %s339_s15, %s586_s0 }
   0x7   :  { %p345_p2 = pnand %p343_p1, %p340_p0 }
   0x9   :  { %348 = shalt.err (!%p345_p2)
}
   0xa   :  { %s349_s20 = scalar_lea.vmem %s17_s10, 16  ;;  %s353_s21 = scalar_lea.vmem %s17_s10, 32 }
   0xb   :  { %p350_p3 = scmp.ne.s32.totalorder %s17_s10, %s349_s20  ;;  %p354_p4 = scmp.lt.s32.totalorder %s17_s10, %s17_s10 }
   0xc   :  { %p355_p5 = scmp.lt.s32.totalorder %s353_s21, %s349_s20 }
   0xe   :  { %p356_p6 = por %p355_p5, %p354_p4 }
  0x10   :  { %p357_p7 = pnand %p356_p6, %p350_p3 }
  0x12   :  { %360 = shalt.err (!%p357_p7)
}
  0x13   :  { %19 = dma.hbm_to_vmem [thread:$0]  %s586_s0, 16, %s17_s10, [#allocation3]  }
  0x14   :  { %s361_s26 = scalar_lea.hbm %s587_s1, 128 }
  0x15   :  { %p362_p8 = scmp.ne.s32.totalorder %s587_s1, %s361_s26  ;;  %p365_p9 = scmp.lt.u32.totalorder %s361_s26, %s587_s1 }
  0x17   :  { %p367_p10 = pnand %p365_p9, %p362_p8 }
  0x19   :  { %370 = shalt.err (!%p367_p10)
}
  0x1a   :  { %s371_s3 = scalar_lea.vmem %s27_s12, 128  ;;  %p376_p12 = scmp.lt.s32.totalorder %s27_s12, %s27_s12 }
  0x1b   :  { %p372_p11 = scmp.ne.s32.totalorder %s27_s12, %s371_s3  ;;  %p377_p13 = scmp.lt.s32.totalorder %s371_s3, %s371_s3 }
  0x1d   :  { %p378_p0 = por %p377_p13, %p376_p12 }
  0x1f   :  { %p379_p1 = pnand %p378_p0, %p372_p11 }
  0x21   :  { %382 = shalt.err (!%p379_p1)
}
  0x22   :  { %29 = dma.hbm_to_vmem [thread:$0]  %s587_s1, 128, %s27_s12, [#allocation6]  }
  0x23   :  { %405 = dma.done.wait [#allocation3], 16  }
  0x24   :  { %406 = vsyncadd [#allocation3], 4294967280 }
  0x25   :  { %407 = dma.done.wait [#allocation6], 128  }
  0x26   :  { %408 = vsyncadd [#allocation6], 4294967168  ;;  %v40_v0 = vlaneseq  ;;  %v413_v1 = vmov 0.0|0.0   ;;  %vm414_vm0 = vmmov 0   ;;  %v415_v2 = vmov 0.0   ;;  %s416_s1 = smov [#allocation7]  }
  0x27   :  { %305 = vmatprep.subr.bf16.mxu0 %v413_v1  ;;  %302 = vmatprep.mubr.msk.f32.mxu0 %vm414_vm0, %v415_v2  ;;  %v478_v15 = vld [vmem:[#allocation5] ss:$0 sm:$0xff]  ;;  %v480_v16 = vld [vmem:[#allocation5 + $0x1] ss:$0 sm:$0xff]  ;;  %s241_s5 = sshll.u32 %s416_s1, 4  ;;  %s242_s5 = int_to_ptr.vmem [resolvable:$true] %s241_s5 }
  0x28   :  { %v459_v3 = vshrl.u32 %v40_v0, 7  ;;  %s383_s6 = scalar_lea.vmem %s242_s5, 16  ;;  %s387_s7 = scalar_lea.vmem %s242_s5, 32 }
  0x29   :  { %p384_p2 = scmp.ne.s32.totalorder %s242_s5, %s383_s6  ;;  %p388_p3 = scmp.lt.s32.totalorder %s242_s5, %s242_s5 }
  0x2a   :  { %v42_v4 = vadd.s32 8, %v459_v3  ;;  %v43_v5 = vadd.s32 16, %v459_v3  ;;  %v44_v6 = vadd.s32 24, %v459_v3  ;;  %v45_v7 = vadd.s32 32, %v459_v3  ;;  %p389_p4 = scmp.lt.s32.totalorder %s387_s7, %s383_s6 }
  0x2b   :  { %v46_v8 = vadd.s32 40, %v459_v3  ;;  %v47_v9 = vadd.s32 48, %v459_v3  ;;  %v48_v10 = vadd.s32 56, %v459_v3  ;;  %v49_v11 = vadd.s32 64, %v459_v3 }
  0x2c   :  { %v470_v12 = vadd.s32 72, %v459_v3  ;;  %v473_v13 = vadd.s32 80, %v459_v3  ;;  %v476_v14 = vadd.s32 88, %v459_v3  ;;  %v483_v17 = vadd.s32 96, %v459_v3  ;;  %p390_p5 = por %p389_p4, %p388_p3 }
  0x2d   :  { %v486_v18 = vadd.s32 104, %v459_v3  ;;  %vm61_vm1 = vcmp.eq.s32.totalorder %v459_v3, %v478_v15  ;;  %vm62_vm2 = vcmp.eq.s32.totalorder %v42_v4, %v478_v15  ;;  %vm97_vm3 = vcmp.eq.s32.totalorder %v459_v3, %v480_v16 }
  0x2e   :  { %vm98_vm4 = vcmp.eq.s32.totalorder %v42_v4, %v480_v16  ;;  %v77_v19 = vsel %vm61_vm1, 1.0, %v415_v2  ;;  %v78_v20 = vsel %vm62_vm2, 1.0, %v415_v2  ;;  %v113_v21 = vsel %vm97_vm3, 1.0, %v415_v2  ;;  %p391_p6 = pnand %p390_p5, %p384_p2 }
  0x2f   :  { %v114_v22 = vsel %vm98_vm4, 1.0, %v415_v2  ;;  %v129_v23 = vsub.f32 %v77_v19, %v113_v21  ;;  %vm63_vm5 = vcmp.eq.s32.totalorder %v43_v5, %v478_v15  ;;  %vm64_vm6 = vcmp.eq.s32.totalorder %v44_v6, %v478_v15 }
  0x30   :  { %v130_v24 = vsub.f32 %v78_v20, %v114_v22  ;;  %v79_v25 = vsel %vm63_vm5, 1.0, %v415_v2  ;;  %v80_v26 = vsel %vm64_vm6, 1.0, %v415_v2  ;;  %vm99_vm7 = vcmp.eq.s32.totalorder %v43_v5, %v480_v16 }
  0x31   :  { %vm100_vm8 = vcmp.eq.s32.totalorder %v44_v6, %v480_v16  ;;  %v115_v28 = vsel %vm99_vm7, 1.0, %v415_v2  ;;  %vm65_vm9 = vcmp.eq.s32.totalorder %v45_v7, %v478_v15  ;;  %vm66_vm10 = vcmp.eq.s32.totalorder %v46_v8, %v478_v15 }
  0x32   :  { %v306_v27 = vpack.c.bf16 %v130_v24, %v129_v23  ;;  %v116_v29 = vsel %vm100_vm8, 1.0, %v415_v2  ;;  %v131_v30 = vsub.f32 %v79_v25, %v115_v28  ;;  %v81_v32 = vsel %vm65_vm9, 1.0, %v415_v2 }
  0x33   :  { %v132_v31 = vsub.f32 %v80_v26, %v116_v29  ;;  %v82_v33 = vsel %vm66_vm10, 1.0, %v415_v2  ;;  %vm101_vm11 = vcmp.eq.s32.totalorder %v45_v7, %v480_v16  ;;  %vm102_vm12 = vcmp.eq.s32.totalorder %v46_v8, %v480_v16 }
  0x34   :  { %307 = vmatpush3.bf16.msra.mxu0 %v306_v27  ;;  %vm67_vm13 = vcmp.eq.s32.totalorder %v47_v9, %v478_v15  ;;  %v117_v35 = vsel %vm101_vm11, 1.0, %v415_v2  ;;  %v118_v36 = vsel %vm102_vm12, 1.0, %v415_v2  ;;  %vm68_vm14 = vcmp.eq.s32.totalorder %v48_v10, %v478_v15 }
  0x35   :  { %308 = vmatprep.subr.bf16.mxu0 %v413_v1  ;;  %v309_v34 = vpack.c.bf16 %v132_v31, %v131_v30  ;;  %v133_v37 = vsub.f32 %v81_v32, %v117_v35  ;;  %v134_v38 = vsub.f32 %v82_v33, %v118_v36  ;;  %v83_v39 = vsel %vm67_vm13, 1.0, %v415_v2 }
  0x36   :  { %v84_v40 = vsel %vm68_vm14, 1.0, %v415_v2  ;;  %vm103_vm15 = vcmp.eq.s32.totalorder %v47_v9, %v480_v16  ;;  %vm104_vm0 = vcmp.eq.s32.totalorder %v48_v10, %v480_v16  ;;  %vm69_vm1 = vcmp.eq.s32.totalorder %v49_v11, %v478_v15 }
  0x37   :  { %vm70_vm2 = vcmp.eq.s32.totalorder %v470_v12, %v478_v15  ;;  %v312_v41 = vpack.c.bf16 %v134_v38, %v133_v37  ;;  %v119_v42 = vsel %vm103_vm15, 1.0, %v415_v2  ;;  %v120_v43 = vsel %vm104_vm0, 1.0, %v415_v2 }
  0x38   :  { %310 = vmatpush3.bf16.msra.mxu0 %v309_v34  ;;  %v85_v44 = vsel %vm69_vm1, 1.0, %v415_v2  ;;  %v135_v45 = vsub.f32 %v83_v39, %v119_v42  ;;  %v136_v46 = vsub.f32 %v84_v40, %v120_v43  ;;  %v86_v47 = vsel %vm70_vm2, 1.0, %v415_v2 }
  0x39   :  { %311 = vmatprep.subr.bf16.mxu0 %v413_v1  ;;  %vm105_vm3 = vcmp.eq.s32.totalorder %v49_v11, %v480_v16  ;;  %vm106_vm4 = vcmp.eq.s32.totalorder %v470_v12, %v480_v16  ;;  %vm71_vm5 = vcmp.eq.s32.totalorder %v473_v13, %v478_v15  ;;  %vm72_vm6 = vcmp.eq.s32.totalorder %v476_v14, %v478_v15 }
  0x3a   :  { %v121_v48 = vsel %vm105_vm3, 1.0, %v415_v2  ;;  %v315_v49 = vpack.c.bf16 %v136_v46, %v135_v45  ;;  %v122_v50 = vsel %vm106_vm4, 1.0, %v415_v2  ;;  %vm107_vm7 = vcmp.eq.s32.totalorder %v473_v13, %v480_v16 }
  0x3b   :  { %v137_v51 = vsub.f32 %v85_v44, %v121_v48  ;;  %v138_v52 = vsub.f32 %v86_v47, %v122_v50  ;;  %vm108_vm8 = vcmp.eq.s32.totalorder %v476_v14, %v480_v16  ;;  %v87_v53 = vsel %vm71_vm5, 1.0, %v415_v2 }
  0x3c   :  { %313 = vmatpush3.bf16.msra.mxu0 %v312_v41  ;;  %v88_v54 = vsel %vm72_vm6, 1.0, %v415_v2  ;;  %v123_v55 = vsel %vm107_vm7, 1.0, %v415_v2  ;;  %v124_v56 = vsel %vm108_vm8, 1.0, %v415_v2  ;;  %vm73_vm9 = vcmp.eq.s32.totalorder %v483_v17, %v478_v15 }
  0x3d   :  { %314 = vmatprep.subr.bf16.mxu0 %v413_v1  ;;  %vm74_vm10 = vcmp.eq.s32.totalorder %v486_v18, %v478_v15  ;;  %v55_v57 = vadd.s32 112, %v459_v3  ;;  %vm109_vm11 = vcmp.eq.s32.totalorder %v483_v17, %v480_v16  ;;  %vm110_vm12 = vcmp.eq.s32.totalorder %v486_v18, %v480_v16  ;;  %v38_v17 = vld [vmem:[#allocation5 + $0x2] sm:$0x1] }
  0x3e   :  { %v56_v58 = vadd.s32 120, %v459_v3  ;;  %v318_v59 = vpack.c.bf16 %v138_v52, %v137_v51  ;;  %v139_v60 = vsub.f32 %v87_v53, %v123_v55  ;;  %v140_v61 = vsub.f32 %v88_v54, %v124_v56 }
  0x3f   :  { %v89_v62 = vsel %vm73_vm9, 1.0, %v415_v2  ;;  %v90_v63 = vsel %vm74_vm10, 1.0, %v415_v2  ;;  %v125_v4 = vsel %vm109_vm11, 1.0, %v415_v2  ;;  %v126_v5 = vsel %vm110_vm12, 1.0, %v415_v2 }
  0x40   :  { %316 = vmatpush3.bf16.msra.mxu0 %v315_v49  ;;  %vm75_vm13 = vcmp.eq.s32.totalorder %v55_v57, %v478_v15  ;;  %vm76_vm14 = vcmp.eq.s32.totalorder %v56_v58, %v478_v15  ;;  %vm111_vm15 = vcmp.eq.s32.totalorder %v55_v57, %v480_v16  ;;  %vm112_vm0 = vcmp.eq.s32.totalorder %v56_v58, %v480_v16  ;;  %v145_v16 = vld [vmem:[#allocation2] sm:$0x1] }
  0x41   :  { %317 = vmatprep.subr.bf16.mxu0 %v413_v1  ;;  %v321_v3 = vpack.c.bf16 %v140_v61, %v139_v60  ;;  %v141_v6 = vsub.f32 %v89_v62, %v125_v4  ;;  %v142_v7 = vsub.f32 %v90_v63, %v126_v5  ;;  %v91_v8 = vsel %vm75_vm13, 1.0, %v415_v2 }
  0x42   :  { %v92_v9 = vsel %vm76_vm14, 1.0, %v415_v2  ;;  %v127_v10 = vsel %vm111_vm15, 1.0, %v415_v2  ;;  %v128_v11 = vsel %vm112_vm0, 1.0, %v415_v2  ;;  %v216_v18 = vsub.f32 0.0, %v38_v17 }
  0x43   :  { %v324_v12 = vpack.c.bf16 %v142_v7, %v141_v6  ;;  %v143_v13 = vsub.f32 %v91_v8, %v127_v10  ;;  %v144_v14 = vsub.f32 %v92_v9, %v128_v11  ;;  %v228_v26 = vand.u32 127, %v40_v0 }
  0x44   :  { %319 = vmatpush3.bf16.msra.mxu0 %v318_v59 }
  0x45   :  { %320 = vmatprep.subr.bf16.mxu0 %v413_v1  ;;  %v327_v15 = vpack.c.bf16 %v144_v14, %v143_v13  ;;  %vm232_vm1 = vcmp.lt.s32.totalorder %v228_v26, 8 }
  0x48   :  { %322 = vmatpush3.bf16.msra.mxu0 %v321_v3 }
  0x49   :  { %323 = vmatprep.subr.bf16.mxu0 %v413_v1 }
  0x4c   :  { %325 = vmatpush3.bf16.msra.mxu0 %v324_v12 }
  0x4d   :  { %326 = vmatprep.subr.bf16.mxu0 %v413_v1 }
  0x50   :  { %328 = vmatpush3.bf16.msra.mxu0 %v327_v15 }
  0x53   :  { %303 = vmatmul.mubr.f32.vlgmr.msra.gmra.mrb[0].mxu0 %v145_v16 }
 0x126   :  { %v212_v19 = vpop.f32.mrb[0].mxu0 }
 0x127   :  { %v217_v20 = vmul.f32 %v216_v18, %v212_v19  ;;  %v304_v21 = vpop.f32.mrb[1].mxu0 }
 0x129   :  { %v219_v22 = vand.u32 2147483647, %v217_v20  ;;  %v218_v28 = vmax.f32 %v217_v20, 0.0 }
 0x12b   :  { %v220_v2 = vsub.f32 0.0, %v219_v22 }
 0x12d   :  { %v221_v23 = vmul.f32 1.442695, %v220_v2 }
 0x12f   :  { %335 = vpow2.f32 %v221_v23 }
 0x139   :  { %v336_v24 = vpop.eup %335 }
 0x13a   :  { %v223_v25 = vadd.f32 1.0, %v336_v24 }
 0x13c   :  { %337 = vlog2.f32 %v223_v25 }
 0x146   :  { %v338_v27 = vpop.eup %337 }
 0x147   :  { %v225_v1 = vmul.f32 0.6931472, %v338_v27 }
 0x149   :  { %v226_v29 = vadd.f32 %v225_v1, %v218_v28 }
 0x14b   :  { %v233_v30 = vsel %vm232_vm1, %v226_v29, 0.0 }
 0x14c   :  { %234 = vst [vmem:[#allocation7] sm:$0x1] %v233_v30 }
 0x14d   :  { %394 = shalt.err (!%p391_p6)
}
 0x14e   :  { %s395_s10 = scalar_lea.hbm %s588_s2, 16 }
 0x14f   :  { %p396_p7 = scmp.ne.s32.totalorder %s588_s2, %s395_s10  ;;  %p399_p8 = scmp.lt.u32.totalorder %s395_s10, %s588_s2 }
 0x151   :  { %p401_p9 = pnand %p399_p8, %p396_p7 }
 0x153   :  { %404 = shalt.err (!%p401_p9)
}
 0x154   :  { %244 = dma.vmem_to_hbm [thread:$0]  %s242_s5, 16, %s588_s2, [#allocation4]  }
 0x155   :  { %409 = dma.done.wait [#allocation4], 16  }
 0x156   :  { %410 = vsyncadd [#allocation4], 4294967280 }
 0x157   :  { %248 = vsyncpa [#allocation3], 1 }
 0x158   :  { %249 = vsyncpa [#allocation6], 1 }
 0x159   :  { %250 = vsyncpa [#allocation4], 1 }

</bundles_post_ra>
